<compile_context>
chip_gen: v7x
topology: tpu7x:2x2x1
jax: 0.10.0
libtpu: 0.0.40
codegen_flags: <defaults>
</compile_context>

<pallas_src>
from functools import partial

import jax
import jax.numpy as jnp
from jax import lax
from jax.experimental import pallas as pl
from jax.experimental.pallas import tpu as pltpu


def _conv1d_relu_kernel(p_ref, w_ref, b_ref, out_ref):
    """relu(patches @ block_diag(w) + bias) in one shot.

    p_ref:   (L_out_pad, B*K*C_in)  im2col patches, batch packed along lanes
    w_ref:   (B*K*C_in, B*C_out)    block-diagonal flattened conv weights
    b_ref:   (1, B*C_out)           bias tiled per batch block
    out_ref: (L_out_pad, B*C_out)   lane-dense, sublane-aligned output slab
    """
    y = jnp.dot(p_ref[...], w_ref[...], preferred_element_type=jnp.float32)
    out_ref[...] = jnp.maximum(y + b_ref[...], 0.0).astype(out_ref.dtype)


@partial(jax.jit, static_argnames=("padding",))
def block_fcn_conv_forward(x, weight, bias, padding=3):
    """x: (B, C_in, L); weight: (C_out, C_in, K); bias: (C_out,).

    Returns relu(conv1d(x)) with shape (B, C_out, L + 2*padding - K + 1),
    matching PyTorch's BlockFCNConv.forward.
    """
    B, C_in, L = x.shape
    C_out, _, K = weight.shape
    L_out = L + 2 * padding - K + 1
    L_out_pad = ((L_out + 7) // 8) * 8          # sublane-align the output store

    x = jnp.asarray(x, jnp.float32)
    weight = jnp.asarray(weight, jnp.float32)
    bias = jnp.asarray(bias, jnp.float32)

    # --- wrapper-side im2col (layout plumbing only; fuses with the pad) -----
    x_pad = jnp.pad(x, ((0, 0), (0, 0), (padding, padding)))      # (B, C_in, L_pad)
    win = jnp.arange(L_out)[:, None] + jnp.arange(K)[None, :]     # (L_out, K)
    pat = x_pad[:, :, win]                                        # (B, C_in, L_out, K)
    # taps flattened k-major / channel-minor to match the weight flatten below
    pat = jnp.transpose(pat, (0, 2, 3, 1)).reshape(B, L_out, K * C_in)
    # pack batch along lanes, pad sublanes up to a multiple of 8
    pat = jnp.transpose(pat, (1, 0, 2)).reshape(L_out, B * K * C_in)
    pat = jnp.pad(pat, ((0, L_out_pad - L_out), (0, 0)))          # (L_out_pad, B*K*C_in)

    # weights: (C_out, C_in, K) -> (K*C_in, C_out), then block-diag over batch
    w2 = jnp.transpose(weight, (2, 1, 0)).reshape(K * C_in, C_out)
    w_blk = jnp.kron(jnp.eye(B, dtype=jnp.float32), w2)           # (B*K*C_in, B*C_out)
    b_blk = jnp.tile(bias, B).reshape(1, B * C_out)                # (1, B*C_out)

    out = pl.pallas_call(
        _conv1d_relu_kernel,
        out_shape=jax.ShapeDtypeStruct((L_out_pad, B * C_out), jnp.float32),
        in_specs=[
            pl.BlockSpec(memory_space=pltpu.MemorySpace.VMEM),  # whole array, resident
            pl.BlockSpec(memory_space=pltpu.MemorySpace.VMEM),
            pl.BlockSpec(memory_space=pltpu.MemorySpace.VMEM),
        ],
        out_specs=pl.BlockSpec(memory_space=pltpu.MemorySpace.VMEM),
    )(pat, w_blk, b_blk)

    # Back to PyTorch's (B, C_out, L_out) layout -- pure layout plumbing.
    out = out[:L_out].reshape(L_out, B, C_out)
    return jnp.transpose(out, (1, 2, 0))


def _conv_relu_reference(x, weight, bias, padding=3):
    """Pure-JAX reference matching torch.nn.Conv1d(+bias) followed by ReLU."""
    y = lax.conv_general_dilated(
        jnp.asarray(x, jnp.float32), jnp.asarray(weight, jnp.float32),
        window_strides=(1,), padding=[(padding, padding)],
        dimension_numbers=("NCH", "OIH", "NCH"),
        precision=lax.Precision.HIGHEST)
    y = y + jnp.asarray(bias, jnp.float32)[None, :, None]
    return jnp.maximum(y, 0.0)


if __name__ == "__main__":
    # BlockFCNConv(in_channel=1, out_channel=64, kernel_size=8, padding=3)
    batch = 2
    in_channel = 1
    out_channel = 64
    kernel_size = 8
    padding = 3
    length = 16

    key = jax.random.PRNGKey(0)
    kx, kw, kb = jax.random.split(key, 3)

    x = jax.random.normal(kx, (batch, in_channel, length), dtype=jnp.float32)

    # kaiming_uniform_-style weight init; PyTorch default uniform bias init.
    fan_in = in_channel * kernel_size
    w_bound = float(jnp.sqrt(6.0 / fan_in))
    b_bound = float(1.0 / jnp.sqrt(jnp.float32(fan_in)))
    weight = jax.random.uniform(kw, (out_channel, in_channel, kernel_size),
                                jnp.float32, -w_bound, w_bound)
    bias = jax.random.uniform(kb, (out_channel,), jnp.float32, -b_bound, b_bound)

    y = block_fcn_conv_forward(x, weight, bias, padding=padding)
    y = jax.block_until_ready(y)

    y_ref = _conv_relu_reference(x, weight, bias, padding=padding)
    assert y.shape == (batch, out_channel, length + 2 * padding - kernel_size + 1)
    assert jnp.allclose(y, y_ref, atol=1e-4, rtol=1e-4), "mismatch vs reference"

    print("KERNEL_OK")
</pallas_src>

<mosaic_0001>
module attributes {stable_mosaic.version = 11 : i64} {
  func.func @_conv1d_relu_kernel(%arg0: memref<16x16xf32, #tpu.memory_space<vmem>>, %arg1: memref<16x128xf32, #tpu.memory_space<vmem>>, %arg2: memref<1x128xf32, #tpu.memory_space<vmem>>, %arg3: memref<16x128xf32, #tpu.memory_space<vmem>>) attributes {dimension_semantics = [], scalar_prefetch = 0 : i64, scratch_operands = 0 : i64, tpu.core_type = #tpu.core_type<tc>} {
    %c0 = arith.constant 0 : index
    %c0_0 = arith.constant 0 : index
    %0 = vector.load %arg0[%c0, %c0_0] : memref<16x16xf32, #tpu.memory_space<vmem>>, vector<16x16xf32>
    %c0_1 = arith.constant 0 : index
    %c0_2 = arith.constant 0 : index
    %1 = vector.load %arg1[%c0_1, %c0_2] : memref<16x128xf32, #tpu.memory_space<vmem>>, vector<16x128xf32>
    %cst = arith.constant dense<0.000000e+00> : vector<16x128xf32>
    %2 = tpu.matmul %0, %1, %cst {dimension_numbers = #tpu.dot_dimension_numbers<[1], [0], [0], [1], [0, 0, 1, 1], [], []>} : vector<16x16xf32>, vector<16x128xf32>, vector<16x128xf32> -> vector<16x128xf32>
    %c0_3 = arith.constant 0 : index
    %c0_4 = arith.constant 0 : index
    %3 = vector.load %arg2[%c0_3, %c0_4] : memref<1x128xf32, #tpu.memory_space<vmem>>, vector<1x128xf32>
    %4 = vector.broadcast %3 : vector<1x128xf32> to vector<16x128xf32>
    %5 = arith.addf %2, %4 : vector<16x128xf32>
    %cst_5 = arith.constant 0.000000e+00 : f32
    %6 = vector.broadcast %cst_5 : f32 to vector<16x128xf32>
    %7 = arith.maximumf %5, %6 : vector<16x128xf32>
    %c0_6 = arith.constant 0 : index
    %c0_7 = arith.constant 0 : index
    %8 = vector.load %arg3[%c0_6, %c0_7] : memref<16x128xf32, #tpu.memory_space<vmem>>, vector<16x128xf32>
    tpu.vector_store %arg3[%c0_6, %c0_7], %7 {strides = array<i32>} : memref<16x128xf32, #tpu.memory_space<vmem>>, vector<16x128xf32>,
    return
  }
}

</mosaic_0001>

<bundles_post_ra>
// kernel: tile.8
= control target key start
LH: loop header
LB: loop body
LE: loop exit
PB: predicated region body
PF: predicated region fallthrough
CT: control target
= control target key end

     0   :  { %s22_s0 = inlined_call_operand.vmem [shape: f32[64], index: 0, kind: input, shape index: {}]   ;;  %s23_s1 = inlined_call_operand.vmem [shape: f32[2,64], index: 1, kind: output, shape index: {}]  }
   0x1   :  { %v4_v0 = vld [vmem:[%s22_s0] ss:$0 sm:$0xff] }
   0x2   :  { %5 = vst [vmem:[%s23_s1] sm:$0x3] %v4_v0 }

// kernel: tile.9
= control target key start
LH: loop header
LB: loop body
LE: loop exit
PB: predicated region body
PF: predicated region fallthrough
CT: control target
= control target key end

     0   :  { %vm7_vm0 = vcmask 523264   ;;  %vm13_vm1 = vcmask 1048064   ;;  %s39_s0 = inlined_call_operand.vmem [shape: f32[2,64], index: 0, kind: input, shape index: {}]   ;;  %s40_s1 = inlined_call_operand.vmem [shape: f32[1,128], index: 1, kind: output, shape index: {}]  }
   0x1   :  { %v4_v0 = vld [vmem:[%s39_s0] sm:$0x3]  ;;  %s22_s0 = smov 64  }
   0x2   :  { %5 = vst [vmem:[#allocation1] sm:$0x3] %v4_v0 }
   0x9   :  { %v10_v1 = vld [vmem:[#allocation1 + $0x1] sm:$0x1]   ;;  %v6_v2 = vld [vmem:[#allocation1] sm:$0x1]  }
   0xa   :  { %11 = vrot.lane.b32.xlu0 %v10_v1, %s22_s0  ;;  %8 = vst.msk [vmem:[#allocation0] sm:$0x1] %vm7_vm0, %v6_v2  }
  0x7c   :  { %v12_v3 = vpop.permute.xlu0 %11  }
  0x7d   :  { %14 = vst.msk [vmem:[#allocation0] sm:$0x1] %vm13_vm1, %v12_v3  }
  0x84   :  { %v18_v4 = vld [vmem:[#allocation0] sm:$0x1] }
  0x85   :  { %20 = vst [vmem:[%s40_s1] sm:$0x1] %v18_v4 }

// kernel: block_fcn_conv_forward.1
= control target key start
LH: loop header
LB: loop body
LE: loop exit
PB: predicated region body
PF: predicated region fallthrough
CT: control target
= control target key end

     0   :  { %vm25_vm0 = vcmask 130048   ;;  %s174_s1 = inlined_call_operand.vmem [shape: f32[16,128], index: 1, kind: input, shape index: {}]   ;;  %s175_s0 = inlined_call_operand.vmem [shape: f32[16,16], index: 0, kind: input, shape index: {}]   ;;  %s176_s2 = inlined_call_operand.vmem [shape: f32[1,128], index: 2, kind: input, shape index: {}]   ;;  %s177_s3 = inlined_call_operand.vmem [shape: f32[16,128], index: 3, kind: output, shape index: {}]  }
   0x1   :  { %v16_v0 = vld [vmem:[%s174_s1] sm:$0xff]  ;;  %v17_v1 = vld [vmem:[%s174_s1 + $0x8] sm:$0xff] }
   0x2   :  { %v14_v2 = vld [vmem:[%s175_s0] sm:$0xff]  ;;  %v129_v3 = vpack.c.bf16 %v17_v1, %v16_v0  ;;  %v15_v4 = vld [vmem:[%s175_s0 + $0x8] sm:$0xff] }
   0x3   :  { %126 = vmatprep.mubr.msk.f32.mxu0 %vm25_vm0, %v14_v2  ;;  %v115_v5 = vld [vmem:[%s176_s2] ss:$0 sm:$0xff] }
   0x4   :  { %130 = vmatprep.subr.bf16.mxu0 %v129_v3 }
   0x5   :  { %132 = vmatpush3.bf16.msra.mxu0 %v129_v3 }
   0x8   :  { %127 = vmatmul.mubr.msk.f32.vlgmr.msra.gmra.mrb[0].mxu0 %vm25_vm0, %v15_v4 }
  0xdb   :  { %v128_v6 = vpop.f32.mrb[0].mxu0 }
  0xdc   :  { %v104_v7 = vadd.f32 %v128_v6, %v115_v5  ;;  %v98_v8 = vpop.f32.mrb[1].mxu0 }
  0xdd   :  { %v99_v9 = vadd.f32 %v115_v5, %v98_v8 }
  0xde   :  { %v108_v10 = vmax.f32 %v104_v7, 0.0 }
  0xdf   :  { %v107_v11 = vmax.f32 %v99_v9, 0.0 }
  0xe0   :  { %110 = vst [vmem:[%s177_s3 + $0x8] sm:$0xff] %v108_v10 }
  0xe1   :  { %109 = vst [vmem:[%s177_s3] sm:$0xff] %v107_v11 }

</bundles_post_ra>
